<compile_context>
chip_gen: v7x
topology: tpu7x:2x2x1
jax: 0.10.0
libtpu: 0.0.40
codegen_flags: <defaults>
</compile_context>

<pallas_src>
import functools

import jax
import jax.numpy as jnp
from jax import lax
from jax.experimental import pallas as pl
from jax.experimental.pallas import tpu as pltpu


def _round_up(x, m):
    return ((x + m - 1) // m) * m


def _vmem_capacity_bytes():
    """Physical VMEM per TensorCore; conservative 64 MiB fallback (v7x)."""
    try:
        cap = getattr(pltpu.get_tpu_info(), "vmem_capacity_bytes", None)
        if cap:
            return int(cap)
    except Exception:
        pass
    return 64 * 1024 * 1024


def _footprint_bytes(tm, tk, D_p, Dout_p, cx, cw, co):
    """Per-step VMEM footprint with default double-buffered BlockSpec tiles."""
    return (2 * tm * D_p * cx          # x tile
            + 2 * D_p * tk * cw        # W1 chunk
            + 2 * tk * Dout_p * cw     # W2 chunk
            + 2 * tm * Dout_p * co     # output tile
            + tm * Dout_p * 4          # f32 accumulator scratch
            + 2 * tm * tk * 4          # h intermediate (f32) + headroom
            + 2 * (tk + Dout_p) * 4)   # bias chunks


def _select_tiles(M, D_p, inner_p, Dout_p, cx, cw, co, budget):
    """Pick (tm, tk): biggest tm that fits (weight-stream intensity), then
    biggest tk (fewer accumulator RMW passes).  tk always divides inner_p."""
    if cw <= 2:   # bf16 operands -> everything is half-size, go wider
        tm_cands = (1024, 768, 512, 384, 256, 192, 128, 64, 32, 16)
    else:
        tm_cands = (512, 384, 256, 192, 128, 64, 32, 16)
    tk_cands = tuple(t for t in (1024, 512, 256, 128) if inner_p % t == 0)
    tm_cap = _round_up(M, 16)
    tm_cands = tuple(min(t, tm_cap) for t in tm_cands)

    for tm in tm_cands:
        for tk in tk_cands:
            if _footprint_bytes(tm, tk, D_p, Dout_p, cx, cw, co) <= budget:
                return tm, tk
    return min(tm_cands), min(tk_cands)


def _ff_kernel(x_ref, w1_ref, b1_ref, w2_ref, b2_ref, o_ref, acc_ref, *, precision):
    # x_ref:  (tm, Dp)        token tile (resident across the inner-dim axis)
    # w1_ref: (Dp, tk)        chunk of W1 columns
    # b1_ref: (1, tk)         matching chunk of b1 (f32)
    # w2_ref: (tk, Doutp)     chunk of W2 rows
    # b2_ref: (1, Doutp)      (f32)
    # o_ref:  (tm, Doutp)     output tile (written on last inner chunk)
    # acc_ref:(tm, Doutp) f32 accumulator scratch
    k = pl.program_id(1)

    @pl.when(k == 0)
    def _():
        acc_ref[...] = jnp.zeros_like(acc_ref)

    # Linear 1 chunk on the MXU: native-dtype operands, f32 accumulate.
    h = jnp.dot(x_ref[...], w1_ref[...],
                preferred_element_type=jnp.float32, precision=precision)
    h = h + b1_ref[...].astype(jnp.float32)

    # Exact erf GELU (matches torch.nn.GELU() default).
    inv_sqrt2 = 0.7071067811865476
    h = 0.5 * h * (1.0 + lax.erf(h * inv_sqrt2))

    # Linear 2 chunk, accumulated over inner-dim chunks.
    acc_ref[...] += jnp.dot(h.astype(w2_ref.dtype), w2_ref[...],
                            preferred_element_type=jnp.float32, precision=precision)

    @pl.when(k == pl.num_programs(1) - 1)
    def _():
        o_ref[...] = (acc_ref[...] + b2_ref[...].astype(jnp.float32)).astype(o_ref.dtype)


def feedforward_pallas(x, w1, b1, w2, b2, *, compute_dtype=None, tm=None, tk=None):
    """x: [B, N, D].  w1: [D, inner], b1: [inner], w2: [inner, Dout], b2: [Dout].

    compute_dtype: dtype fed to the MXU.  None -> x.dtype (f32 inputs use
    pinned HIGHEST precision and bit-match an f32 reference).  Pass
    jnp.bfloat16 for the fast path on v5e/v6e/v7x (f32 accumulate kept)."""
    B, N, D = x.shape
    inner = w1.shape[1]
    Dout = w2.shape[1]
    M = B * N
    out_dtype = x.dtype

    if compute_dtype is None:
        compute_dtype = x.dtype
    compute_dtype = jnp.dtype(compute_dtype)
    # Explicit precision: deterministic f32 path, default (fast) bf16 path.
    precision = (lax.Precision.HIGHEST if compute_dtype == jnp.dtype(jnp.float32)
                 else lax.Precision.DEFAULT)

    cx = compute_dtype.itemsize          # x / weight tile bytes per element
    cw = compute_dtype.itemsize
    co = jnp.dtype(out_dtype).itemsize   # output tile bytes per element

    # Lane-dense (multiple-of-128) feature axes; zero padding is exact here
    # (gelu(0)=0 and padded weight rows/cols are zero).
    D_p = _round_up(D, 128)
    inner_p = _round_up(inner, 128)
    Dout_p = _round_up(Dout, 128)

    # Generation-aware VMEM budget for the per-step working set.
    vmem_cap = _vmem_capacity_bytes()
    budget = max(vmem_cap - 16 * 1024 * 1024, 16 * 1024 * 1024)

    if tm is None or tk is None:
        tm_auto, tk_auto = _select_tiles(M, D_p, inner_p, Dout_p, cx, cw, co, budget)
        tm = tm_auto if tm is None else tm
        tk = tk_auto if tk is None else tk
    tm = _round_up(min(tm, _round_up(M, 16)), 16)
    tk = min(_round_up(tk, 128), inner_p)
    inner_p = _round_up(inner_p, tk)     # auto path: tk already divides inner_p

    # Megacore friendliness: prefer an even number of M tiles so both v7x
    # TensorCores get work along the "parallel" grid axis (tm only shrinks).
    n_m = -(-M // tm)
    if n_m > 1 and n_m % 2 == 1:
        n_m += 1
        tm = _round_up(-(-M // n_m), 16)
    M_p = _round_up(M, tm)

    def _prep(a, rows, cols, dtype):
        # Only materialize cast / pad copies when actually required.
        if a.dtype != dtype:
            a = a.astype(dtype)
        if a.shape != (rows, cols):
            a = jnp.pad(a, ((0, rows - a.shape[0]), (0, cols - a.shape[1])))
        return a

    x2 = _prep(x.reshape(M, D), M_p, D_p, compute_dtype)
    # NOTE: for a persistent layer, pre-pad/cast the weights once outside the
    # forward pass; here the pad/cast is skipped whenever shapes/dtypes match.
    w1_p = _prep(w1, D_p, inner_p, compute_dtype)
    w2_p = _prep(w2, inner_p, Dout_p, compute_dtype)
    b1_p = _prep(b1.reshape(1, inner), 1, inner_p, jnp.float32)
    b2_p = _prep(b2.reshape(1, Dout), 1, Dout_p, jnp.float32)

    grid = (M_p // tm, inner_p // tk)

    # VMEM limit: enough for the double-buffered working set + compiler
    # scratch, but never above what this generation physically has.
    fp = _footprint_bytes(tm, tk, D_p, Dout_p, cx, cw, co)
    vmem_limit = max(32 * 1024 * 1024, fp + fp // 4 + 4 * 1024 * 1024)
    vmem_limit = int(min(vmem_limit, vmem_cap - 8 * 1024 * 1024))
    vmem_limit = max(vmem_limit, 16 * 1024 * 1024)

    # Accurate HBM traffic: weights (and biases) are re-streamed once per M
    # tile; x is read once, output written once.
    n_m_tiles = grid[0]
    w_stream_bytes = (w1_p.size * cw + w2_p.size * cw
                      + b1_p.size * 4 + b2_p.size * 4)
    cost = pl.CostEstimate(
        flops=2 * M_p * (D_p * inner_p + inner_p * Dout_p),
        transcendentals=M_p * inner_p,
        bytes_accessed=int(x2.size * cx + M_p * Dout_p * co
                           + n_m_tiles * w_stream_bytes),
    )

    out2 = pl.pallas_call(
        functools.partial(_ff_kernel, precision=precision),
        out_shape=jax.ShapeDtypeStruct((M_p, Dout_p), out_dtype),
        grid_spec=pltpu.PrefetchScalarGridSpec(
            num_scalar_prefetch=0,
            grid=grid,
            in_specs=[
                pl.BlockSpec((tm, D_p), lambda i, k: (i, 0)),       # x tile
                pl.BlockSpec((D_p, tk), lambda i, k: (0, k)),       # W1 chunk
                pl.BlockSpec((1, tk), lambda i, k: (0, k)),         # b1 chunk
                pl.BlockSpec((tk, Dout_p), lambda i, k: (k, 0)),    # W2 chunk
                pl.BlockSpec((1, Dout_p), lambda i, k: (0, 0)),     # b2
            ],
            out_specs=pl.BlockSpec((tm, Dout_p), lambda i, k: (i, 0)),
            scratch_shapes=[pltpu.VMEM((tm, Dout_p), jnp.float32)],
        ),
        compiler_params=pltpu.CompilerParams(
            dimension_semantics=("parallel", "arbitrary"),
            vmem_limit_bytes=vmem_limit,
        ),
        cost_estimate=cost,
    )(x2, w1_p, b1_p, w2_p, b2_p)

    return out2[:M, :Dout].reshape(B, N, Dout)


def init_params(key, dim, mult=4, dim_out=None, dtype=jnp.float32):
    """Deterministic init mimicking nn.Linear default (uniform +/- 1/sqrt(fan_in))."""
    dim_out = dim if dim_out is None else dim_out
    inner = int(dim * mult)
    k1, k2, k3, k4 = jax.random.split(key, 4)
    bound1 = 1.0 / jnp.sqrt(dim)
    bound2 = 1.0 / jnp.sqrt(inner)
    # Stored as [in, out] so the kernel computes x @ W (== torch x @ W.T).
    w1 = jax.random.uniform(k1, (dim, inner), dtype, -bound1, bound1)
    b1 = jax.random.uniform(k2, (inner,), dtype, -bound1, bound1)
    w2 = jax.random.uniform(k3, (inner, dim_out), dtype, -bound2, bound2)
    b2 = jax.random.uniform(k4, (dim_out,), dtype, -bound2, bound2)
    return w1, b1, w2, b2


def feedforward_ref(x, w1, b1, w2, b2):
    h = x @ w1 + b1
    h = 0.5 * h * (1.0 + lax.erf(h * 0.7071067811865476))
    return h @ w2 + b2


if __name__ == "__main__":
    key = jax.random.PRNGKey(0)
    kx, kp = jax.random.split(key)

    B, N, dim, mult = 2, 8, 32, 4  # inner_dim = 128, dim_out = 32
    x = jax.random.normal(kx, (B, N, dim), jnp.float32)
    w1, b1, w2, b2 = init_params(kp, dim, mult)
    ref = feedforward_ref(x, w1, b1, w2, b2)

    # Exact path: f32 operands, pinned HIGHEST precision -> matches reference.
    out = feedforward_pallas(x, w1, b1, w2, b2)
    out = jax.block_until_ready(out)
    assert out.shape == (B, N, dim)
    assert jnp.allclose(out, ref, atol=1e-5, rtol=1e-5), "f32 path mismatch vs reference"

    # Fast path: bf16 MXU operands, f32 accumulate (recommended on v5e/v6e/v7x).
    out_bf16 = feedforward_pallas(x, w1, b1, w2, b2, compute_dtype=jnp.bfloat16)
    out_bf16 = jax.block_until_ready(out_bf16)
    assert out_bf16.shape == (B, N, dim)
    assert jnp.allclose(out_bf16, ref, atol=5e-2, rtol=5e-2), "bf16 path mismatch vs reference"

    print("KERNEL_OK")
</pallas_src>

<mosaic_0001>
module attributes {stable_mosaic.version = 11 : i64} {
  func.func @_ff_kernel(%arg0: i32, %arg1: i32, %arg2: memref<16x128xf32, #tpu.memory_space<vmem>>, %arg3: memref<128x128xf32, #tpu.memory_space<vmem>>, %arg4: memref<1x128xf32, #tpu.memory_space<vmem>>, %arg5: memref<128x128xf32, #tpu.memory_space<vmem>>, %arg6: memref<1x128xf32, #tpu.memory_space<vmem>>, %arg7: memref<16x128xf32, #tpu.memory_space<vmem>>, %arg8: memref<16x128xf32, #tpu.memory_space<vmem>>) attributes {dimension_semantics = [#tpu.dimension_semantics<parallel>, #tpu.dimension_semantics<arbitrary>], iteration_bounds = array<i64: 1, 1>, scalar_prefetch = 0 : i64, scratch_operands = 1 : i64, tpu.core_type = #tpu.core_type<tc>, window_params = [{transform_indices = @transform_0, window_bounds = array<i64: 16, 128>}, {transform_indices = @transform_1, window_bounds = array<i64: 128, 128>}, {transform_indices = @transform_2, window_bounds = array<i64: 1, 128>}, {transform_indices = @transform_3, window_bounds = array<i64: 128, 128>}, {pipeline_mode = #tpu.pipeline_mode<synchronous>, transform_indices = @transform_4, window_bounds = array<i64: 1, 128>}, {transform_indices = @transform_5, window_bounds = array<i64: 16, 128>}]} {
    %c0_i32 = arith.constant 0 : i32
    %0 = arith.cmpi eq, %arg1, %c0_i32 : i32
    %1 = arith.extui %0 : i1 to i32
    %c0_i32_0 = arith.constant 0 : i32
    %2 = arith.cmpi ne, %1, %c0_i32_0 : i32
    scf.if %2 {
      %cst_18 = arith.constant 0.000000e+00 : f32
      %25 = vector.broadcast %cst_18 : f32 to vector<16x128xf32>
      %c0_19 = arith.constant 0 : index
      %c0_20 = arith.constant 0 : index
      %26 = vector.load %arg8[%c0_19, %c0_20] : memref<16x128xf32, #tpu.memory_space<vmem>>, vector<16x128xf32>
      tpu.vector_store %arg8[%c0_19, %c0_20], %25 {strides = array<i32>} : memref<16x128xf32, #tpu.memory_space<vmem>>, vector<16x128xf32>,
    } else {
    }
    %c0 = arith.constant 0 : index
    %c0_1 = arith.constant 0 : index
    %3 = vector.load %arg2[%c0, %c0_1] : memref<16x128xf32, #tpu.memory_space<vmem>>, vector<16x128xf32>
    %c0_2 = arith.constant 0 : index
    %c0_3 = arith.constant 0 : index
    %4 = vector.load %arg3[%c0_2, %c0_3] : memref<128x128xf32, #tpu.memory_space<vmem>>, vector<128x128xf32>
    %cst = arith.constant dense<0.000000e+00> : vector<16x128xf32>
    %5 = tpu.matmul %3, %4, %cst {dimension_numbers = #tpu.dot_dimension_numbers<[1], [0], [0], [1], [0, 0, 1, 1], [], []>, precision = #tpu.contract_precision<fp32>} : vector<16x128xf32>, vector<128x128xf32>, vector<16x128xf32> -> vector<16x128xf32>
    %c0_4 = arith.constant 0 : index
    %c0_5 = arith.constant 0 : index
    %6 = vector.load %arg4[%c0_4, %c0_5] : memref<1x128xf32, #tpu.memory_space<vmem>>, vector<1x128xf32>
    %7 = vector.broadcast %6 : vector<1x128xf32> to vector<16x128xf32>
    %8 = arith.addf %5, %7 : vector<16x128xf32>
    %cst_6 = arith.constant 5.000000e-01 : f32
    %9 = vector.broadcast %cst_6 : f32 to vector<16x128xf32>
    %10 = arith.mulf %9, %8 : vector<16x128xf32>
    %cst_7 = arith.constant 0.707106769 : f32
    %11 = vector.broadcast %cst_7 : f32 to vector<16x128xf32>
    %12 = arith.mulf %8, %11 : vector<16x128xf32>
    %13 = math.erf %12 : vector<16x128xf32>
    %cst_8 = arith.constant 1.000000e+00 : f32
    %14 = vector.broadcast %cst_8 : f32 to vector<16x128xf32>
    %15 = arith.addf %14, %13 : vector<16x128xf32>
    %16 = arith.mulf %10, %15 : vector<16x128xf32>
    %c0_9 = arith.constant 0 : index
    %c0_10 = arith.constant 0 : index
    %17 = vector.load %arg8[%c0_9, %c0_10] : memref<16x128xf32, #tpu.memory_space<vmem>>, vector<16x128xf32>
    %c0_11 = arith.constant 0 : index
    %c0_12 = arith.constant 0 : index
    %18 = vector.load %arg5[%c0_11, %c0_12] : memref<128x128xf32, #tpu.memory_space<vmem>>, vector<128x128xf32>
    %cst_13 = arith.constant dense<0.000000e+00> : vector<16x128xf32>
    %19 = tpu.matmul %16, %18, %cst_13 {dimension_numbers = #tpu.dot_dimension_numbers<[1], [0], [0], [1], [0, 0, 1, 1], [], []>, precision = #tpu.contract_precision<fp32>} : vector<16x128xf32>, vector<128x128xf32>, vector<16x128xf32> -> vector<16x128xf32>
    %20 = arith.addf %17, %19 : vector<16x128xf32>
    %c0_14 = arith.constant 0 : index
    %c0_15 = arith.constant 0 : index
    %21 = vector.load %arg8[%c0_14, %c0_15] : memref<16x128xf32, #tpu.memory_space<vmem>>, vector<16x128xf32>
    tpu.vector_store %arg8[%c0_14, %c0_15], %20 {strides = array<i32>} : memref<16x128xf32, #tpu.memory_space<vmem>>, vector<16x128xf32>,
    %c0_i32_16 = arith.constant 0 : i32
    %22 = arith.cmpi eq, %arg1, %c0_i32_16 : i32
    %23 = arith.extui %22 : i1 to i32
    %c0_i32_17 = arith.constant 0 : i32
    %24 = arith.cmpi ne, %23, %c0_i32_17 : i32
    scf.if %24 {
      %c0_18 = arith.constant 0 : index
      %c0_19 = arith.constant 0 : index
      %25 = vector.load %arg8[%c0_18, %c0_19] : memref<16x128xf32, #tpu.memory_space<vmem>>, vector<16x128xf32>
      %c0_20 = arith.constant 0 : index
      %c0_21 = arith.constant 0 : index
      %26 = vector.load %arg6[%c0_20, %c0_21] : memref<1x128xf32, #tpu.memory_space<vmem>>, vector<1x128xf32>
      %27 = vector.broadcast %26 : vector<1x128xf32> to vector<16x128xf32>
      %28 = arith.addf %25, %27 : vector<16x128xf32>
      %c0_22 = arith.constant 0 : index
      %c0_23 = arith.constant 0 : index
      %29 = vector.load %arg7[%c0_22, %c0_23] : memref<16x128xf32, #tpu.memory_space<vmem>>, vector<16x128xf32>
      tpu.vector_store %arg7[%c0_22, %c0_23], %28 {strides = array<i32>} : memref<16x128xf32, #tpu.memory_space<vmem>>, vector<16x128xf32>,
    } else {
    }
    return
  }
  func.func @transform_0(%arg0: i32, %arg1: i32) -> (i32, i32) {
    %c0_i32 = arith.constant 0 : i32
    %c0_i32_0 = arith.constant 0 : i32
    return %arg0, %c0_i32 : i32, i32
  }
  func.func @transform_1(%arg0: i32, %arg1: i32) -> (i32, i32) {
    %c0_i32 = arith.constant 0 : i32
    %c0_i32_0 = arith.constant 0 : i32
    return %c0_i32, %arg1 : i32, i32
  }
  func.func @transform_2(%arg0: i32, %arg1: i32) -> (i32, i32) {
    %c0_i32 = arith.constant 0 : i32
    %c0_i32_0 = arith.constant 0 : i32
    return %c0_i32, %arg1 : i32, i32
  }
  func.func @transform_3(%arg0: i32, %arg1: i32) -> (i32, i32) {
    %c0_i32 = arith.constant 0 : i32
    %c0_i32_0 = arith.constant 0 : i32
    return %arg1, %c0_i32 : i32, i32
  }
  func.func @transform_4(%arg0: i32, %arg1: i32) -> (i32, i32) {
    %c0_i32 = arith.constant 0 : i32
    %c0_i32_0 = arith.constant 0 : i32
    %c0_i32_1 = arith.constant 0 : i32
    return %c0_i32, %c0_i32_0 : i32, i32
  }
  func.func @transform_5(%arg0: i32, %arg1: i32) -> (i32, i32) {
    %c0_i32 = arith.constant 0 : i32
    %c0_i32_0 = arith.constant 0 : i32
    return %arg0, %c0_i32 : i32, i32
  }
}

</mosaic_0001>

<bundles_post_ra>
// kernel: tpu_custom_call.1
= control target key start
LH: loop header
LB: loop body
LE: loop exit
PB: predicated region body
PF: predicated region fallthrough
CT: control target
= control target key end

     0   :  { %10 = vsyncpa [#allocation4], 0  ;;  %s3311_s0 = inlined_call_operand.hbm [shape: f32[16,128], index: 0, kind: input, shape index: {}]   ;;  %s3312_s1 = inlined_call_operand.hbm [shape: f32[128,128], index: 1, kind: input, shape index: {}]   ;;  %s3313_s2 = inlined_call_operand.vmem [shape: f32[1,128], index: 2, kind: input, shape index: {}]   ;;  %s3314_s3 = inlined_call_operand.hbm [shape: f32[128,128], index: 3, kind: input, shape index: {}]   ;;  %s3315_s4 = inlined_call_operand.vmem [shape: f32[1,128], index: 4, kind: input, shape index: {}]   ;;  %s3316_s5 = inlined_call_operand.hbm [shape: f32[16,128], index: 5, kind: output, shape index: {}]  }
   0x1   :  { %11 = vsyncpa [#allocation7], 0 }
   0x2   :  { %12 = vsyncpa [#allocation5], 0  ;;  %s2675_s18 = smov [#allocation6]   ;;  %s2676_s20 = smov [#allocation3]  }
   0x3   :  { %s30_s19 = sshll.u32 %s2675_s18, 4  ;;  %s18_s21 = sshll.u32 %s2676_s20, 4  ;;  %s31_s19 = int_to_ptr.vmem [resolvable:$true] %s30_s19  ;;  %s2711_s21 = int_to_ptr.vmem [resolvable:$true] %s18_s21 }
   0x4   :  { %s2581_s24 = scalar_lea.hbm %s3312_s1, 2048 }
   0x5   :  { %p2582_p0 = scmp.ne.s32.totalorder %s3312_s1, %s2581_s24  ;;  %p2585_p1 = scmp.lt.u32.totalorder %s2581_s24, %s3312_s1 }
   0x7   :  { %p2587_p2 = pnand %p2585_p1, %p2582_p0 }
   0x9   :  { %2590 = shalt.err (!%p2587_p2)
}
   0xa   :  { %s2591_s29 = scalar_lea.vmem %s31_s19, 2048  ;;  %p2596_p4 = scmp.lt.s32.totalorder %s31_s19, %s31_s19 }
   0xb   :  { %p2592_p3 = scmp.ne.s32.totalorder %s31_s19, %s2591_s29  ;;  %p2597_p5 = scmp.lt.s32.totalorder %s2591_s29, %s2591_s29 }
   0xd   :  { %p2598_p6 = por %p2597_p5, %p2596_p4 }
   0xf   :  { %p2599_p7 = pnand %p2598_p6, %p2592_p3 }
  0x11   :  { %2602 = shalt.err (!%p2599_p7)
}
  0x12   :  { %s2677_s30 = smov 128   ;;  %s2678_s6 = smov 8  }
  0x13   :  { %36 = dma.hbm_to_vmem [thread:$0]  %s3312_s1, 2048, %s31_s19, [#allocation7], %s2677_s30, %s2677_s30, %s2678_s6  }
  0x14   :  { %s2603_s11 = scalar_lea.hbm %s3311_s0, 256 }
  0x15   :  { %p2604_p8 = scmp.ne.s32.totalorder %s3311_s0, %s2603_s11  ;;  %p2607_p9 = scmp.lt.u32.totalorder %s2603_s11, %s3311_s0 }
  0x17   :  { %p2609_p10 = pnand %p2607_p9, %p2604_p8 }
  0x19   :  { %2612 = shalt.err (!%p2609_p10)
}
  0x1a   :  { %s2613_s16 = scalar_lea.vmem %s2711_s21, 256  ;;  %p2618_p12 = scmp.lt.s32.totalorder %s2711_s21, %s2711_s21 }
  0x1b   :  { %p2614_p11 = scmp.ne.s32.totalorder %s2711_s21, %s2613_s16  ;;  %p2619_p13 = scmp.lt.s32.totalorder %s2613_s16, %s2613_s16 }
  0x1d   :  { %p2620_p0 = por %p2619_p13, %p2618_p12 }
  0x1f   :  { %p2621_p1 = pnand %p2620_p0, %p2614_p11 }
  0x21   :  { %2624 = shalt.err (!%p2621_p1)
}
  0x22   :  { %24 = dma.hbm_to_vmem [thread:$0]  %s3311_s0, 256, %s2711_s21, [#allocation4], %s2677_s30, %s2677_s30, %s2678_s6  }
  0x23   :  { %s2679_s18 = smov [#allocation8]   ;;  %s2625_s23 = scalar_lea.hbm %s3314_s3, 2048 }
  0x24   :  { %s44_s19 = sshll.u32 %s2679_s18, 4  ;;  %p2626_p2 = scmp.ne.s32.totalorder %s3314_s3, %s2625_s23  ;;  %s45_s19 = int_to_ptr.vmem [resolvable:$true] %s44_s19 }
  0x25   :  { %p2629_p3 = scmp.lt.u32.totalorder %s2625_s23, %s3314_s3 }
  0x27   :  { %p2631_p4 = pnand %p2629_p3, %p2626_p2 }
  0x29   :  { %2634 = shalt.err (!%p2631_p4)
}
  0x2a   :  { %s2635_s28 = scalar_lea.vmem %s45_s19, 2048  ;;  %p2640_p6 = scmp.lt.s32.totalorder %s45_s19, %s45_s19 }
  0x2b   :  { %p2636_p5 = scmp.ne.s32.totalorder %s45_s19, %s2635_s28  ;;  %p2641_p7 = scmp.lt.s32.totalorder %s2635_s28, %s2635_s28 }
  0x2d   :  { %p2642_p8 = por %p2641_p7, %p2640_p6 }
  0x2f   :  { %p2643_p9 = pnand %p2642_p8, %p2636_p5 }
  0x31   :  { %2646 = shalt.err (!%p2643_p9)
}
  0x32   :  { %50 = dma.hbm_to_vmem [thread:$0]  %s3314_s3, 2048, %s45_s19, [#allocation7], %s2677_s30, %s2677_s30, %s2678_s6  }
  0x33   :  { %2669 = dma.done.wait [#allocation4], 256  }
  0x34   :  { %2670 = vsyncadd [#allocation4], 4294967040 }
  0x35   :  { %2671 = dma.done.wait [#allocation7], 4096  }
  0x36   :  { %2672 = vsyncadd [#allocation7], 4294963200  ;;  %v70_v0 = vld [vmem:[#allocation6] sm:$0xff]  ;;  %v71_v1 = vld [vmem:[#allocation6 + $0x8] sm:$0xff]  ;;  %s2680_s8 = smov [#allocation9]  }
  0x37   :  { %v72_v2 = vld [vmem:[#allocation6 + $0x10] sm:$0xff]  ;;  %v94_v3 = vand.u32 4294901760, %v70_v0  ;;  %v97_v4 = vand.u32 4294901760, %v71_v1  ;;  %v73_v5 = vld [vmem:[#allocation6 + $0x18] sm:$0xff]  ;;  %v74_v7 = vld [vmem:[#allocation6 + $0x20] sm:$0xff]  ;;  %s1514_s9 = sshll.u32 %s2680_s8, 4  ;;  %s1515_s9 = int_to_ptr.vmem [resolvable:$true] %s1514_s9 }
  0x38   :  { %v100_v6 = vand.u32 4294901760, %v72_v2  ;;  %v75_v8 = vld [vmem:[#allocation6 + $0x28] sm:$0xff]  ;;  %v103_v9 = vand.u32 4294901760, %v73_v5  ;;  %v106_v11 = vand.u32 4294901760, %v74_v7  ;;  %v2767_v14 = vld [vmem:[#allocation6 + $0x30] sm:$0xff]  ;;  %v2769_v15 = vld [vmem:[#allocation6 + $0x38] sm:$0xff]  ;;  %p2652_p11 = scmp.lt.s32.totalorder %s1515_s9, %s1515_s9 }
  0x39   :  { %v2763_v10 = vpack.c.bf16 %v97_v4, %v94_v3  ;;  %v109_v12 = vand.u32 4294901760, %v75_v8  ;;  %v68_v16 = vld [vmem:[#allocation3] sm:$0xff]  ;;  %v112_v19 = vand.u32 4294901760, %v2767_v14  ;;  %v115_v20 = vand.u32 4294901760, %v2769_v15  ;;  %v78_v21 = vld [vmem:[#allocation6 + $0x40] sm:$0xff]  ;;  %v79_v22 = vld [vmem:[#allocation6 + $0x48] sm:$0xff] }
  0x3a   :  { %v2765_v13 = vpack.c.bf16 %v103_v9, %v100_v6  ;;  %v2773_v17 = vand.u32 4294901760, %v68_v16  ;;  %v2785_v25 = vsub.f32 %v70_v0, %v94_v3  ;;  %v118_v27 = vand.u32 4294901760, %v78_v21  ;;  %v69_v29 = vld [vmem:[#allocation3 + $0x8] sm:$0xff]  ;;  %v80_v30 = vld [vmem:[#allocation6 + $0x50] sm:$0xff]  ;;  %v82_v33 = vld [vmem:[#allocation6 + $0x60] sm:$0xff]  ;;  %s2647_s10 = scalar_lea.vmem %s1515_s9, 256 }
  0x3b   :  { %2166 = vmatprep.subr.bf16.mxu0 %v2763_v10  ;;  %v2776_v18 = vpack.c.bf16 %v109_v12, %v106_v11  ;;  %v2788_v26 = vpack.c.bf16 %v115_v20, %v112_v19  ;;  %v121_v28 = vand.u32 4294901760, %v79_v22  ;;  %v81_v31 = vld [vmem:[#allocation6 + $0x58] sm:$0xff]  ;;  %v83_v34 = vld [vmem:[#allocation6 + $0x68] sm:$0xff]  ;;  %v84_v35 = vld [vmem:[#allocation6 + $0x70] sm:$0xff]  ;;  %v2793_v36 = vsub.f32 %v71_v1, %v97_v4  ;;  %p2648_p10 = scmp.ne.s32.totalorder %s1515_s9, %s2647_s10  ;;  %p2653_p12 = scmp.lt.s32.totalorder %s2647_s10, %s2647_s10 }
  0x3c   :  { %2168 = vmatpush3.bf16.msra.mxu0 %v2763_v10  ;;  %v2781_v23 = vsub.f32 %v68_v16, %v2773_v17  ;;  %v85_v37 = vld [vmem:[#allocation6 + $0x78] sm:$0xff]  ;;  %v197_v39 = vand.u32 4294901760, %v2785_v25  ;;  %v2797_v40 = vand.u32 4294901760, %v69_v29  ;;  %v2799_v41 = vsub.f32 %v72_v2, %v100_v6 }
  0x3d   :  { %2170 = vmatprep.subr.bf16.mxu0 %v2765_v13  ;;  %v2802_v42 = vpack.c.bf16 %v121_v28, %v118_v27  ;;  %v124_v43 = vand.u32 4294901760, %v80_v30  ;;  %v127_v44 = vand.u32 4294901760, %v81_v31  ;;  %v130_v45 = vand.u32 4294901760, %v82_v33  ;;  %p2654_p13 = por %p2653_p12, %p2652_p11 }
  0x3e   :  { %v176_v24 = vand.u32 4294901760, %v2781_v23  ;;  %v133_v46 = vand.u32 4294901760, %v83_v34  ;;  %v136_v47 = vand.u32 4294901760, %v84_v35  ;;  %v139_v48 = vand.u32 4294901760, %v85_v37 }
  0x3f   :  { %v204_v49 = vand.u32 4294901760, %v2793_v36  ;;  %v2805_v50 = vsub.f32 %v73_v5, %v103_v9  ;;  %v2807_v51 = vsub.f32 %v74_v7, %v106_v11  ;;  %v198_v52 = vsub.f32 %v2785_v25, %v197_v39  ;;  %p2655_p0 = pnand %p2654_p13, %p2648_p10 }
  0x40   :  { %2172 = vmatpush3.bf16.msra.mxu0 %v2765_v13  ;;  %v177_v32 = vsub.f32 %v2781_v23, %v176_v24  ;;  %v2812_v53 = vsub.f32 %v69_v29, %v2797_v40  ;;  %v211_v54 = vand.u32 4294901760, %v2799_v41  ;;  %v2815_v55 = vsub.f32 %v75_v8, %v109_v12 }
  0x41   :  { %2174 = vmatprep.subr.bf16.mxu0 %v2776_v18  ;;  %v2818_v56 = vpack.c.bf16 %v127_v44, %v124_v43  ;;  %v2820_v57 = vpack.c.bf16 %v133_v46, %v130_v45  ;;  %v2822_v58 = vpack.c.bf16 %v139_v48, %v136_v47  ;;  %v205_v59 = vsub.f32 %v2793_v36, %v204_v49 }
  0x42   :  { %v178_v38 = vand.u32 4294901760, %v177_v32  ;;  %v218_v60 = vand.u32 4294901760, %v2805_v50  ;;  %v225_v61 = vand.u32 4294901760, %v2807_v51  ;;  %v199_v62 = vand.u32 4294901760, %v198_v52 }
  0x43   :  { %v186_v63 = vand.u32 4294901760, %v2812_v53  ;;  %v212_v0 = vsub.f32 %v2799_v41, %v211_v54  ;;  %v232_v1 = vand.u32 4294901760, %v2815_v55  ;;  %v2833_v2 = vsub.f32 %v2767_v14, %v112_v19 }
  0x44   :  { %2176 = vmatpush3.bf16.msra.mxu0 %v2776_v18  ;;  %1777 = vmatprep.mubr.f32.mxu0 %v178_v38  ;;  %v2836_v3 = vsub.f32 %v2769_v15, %v115_v20  ;;  %v2838_v4 = vsub.f32 %v78_v21, %v118_v27  ;;  %v2840_v5 = vsub.f32 %v79_v22, %v121_v28  ;;  %v206_v11 = vand.u32 4294901760, %v205_v59 }
  0x45   :  { %2178 = vmatprep.subr.bf16.mxu0 %v2788_v26  ;;  %v2842_v6 = vsub.f32 %v80_v30, %v124_v43  ;;  %v2844_v7 = vsub.f32 %v81_v31, %v127_v44  ;;  %v2846_v8 = vsub.f32 %v82_v33, %v130_v45  ;;  %v2848_v9 = vsub.f32 %v83_v34, %v133_v46 }
  0x46   :  { %v219_v12 = vsub.f32 %v2805_v50, %v218_v60  ;;  %v2851_v14 = vsub.f32 %v84_v35, %v136_v47  ;;  %v2853_v16 = vsub.f32 %v85_v37, %v139_v48  ;;  %v187_v15 = vsub.f32 %v2812_v53, %v186_v63 }
  0x47   :  { %v213_v19 = vand.u32 4294901760, %v212_v0  ;;  %v226_v20 = vsub.f32 %v2807_v51, %v225_v61  ;;  %v233_v21 = vsub.f32 %v2815_v55, %v232_v1  ;;  %v239_v22 = vand.u32 4294901760, %v2833_v2 }
  0x48   :  { %2180 = vmatpush3.bf16.msra.mxu0 %v2788_v26  ;;  %v246_v27 = vand.u32 4294901760, %v2836_v3  ;;  %v253_v28 = vand.u32 4294901760, %v2838_v4  ;;  %v260_v29 = vand.u32 4294901760, %v2840_v5  ;;  %v267_v30 = vand.u32 4294901760, %v2842_v6 }
  0x49   :  { %2182 = vmatprep.subr.bf16.mxu0 %v2802_v42  ;;  %v274_v31 = vand.u32 4294901760, %v2844_v7  ;;  %v281_v32 = vand.u32 4294901760, %v2846_v8  ;;  %v288_v33 = vand.u32 4294901760, %v2848_v9  ;;  %v295_v34 = vand.u32 4294901760, %v2851_v14 }
  0x4a   :  { %v302_v35 = vand.u32 4294901760, %v2853_v16  ;;  %v2872_v37 = vpack.c.bf16 %v204_v49, %v197_v39  ;;  %v2874_v38 = vpack.c.bf16 %v218_v60, %v211_v54  ;;  %v2197_v43 = vpack.c.bf16 %v206_v11, %v199_v62 }
  0x4b   :  { %v2877_v44 = vpack.c.bf16 %v232_v1, %v225_v61  ;;  %v2879_v45 = vpack.c.bf16 %v246_v27, %v239_v22  ;;  %v2881_v46 = vpack.c.bf16 %v260_v29, %v253_v28  ;;  %v220_v47 = vand.u32 4294901760, %v219_v12 }
  0x4c   :  { %2184 = vmatpush3.bf16.msra.mxu0 %v2802_v42  ;;  %v2884_v48 = vpack.c.bf16 %v274_v31, %v267_v30  ;;  %v2886_v52 = vpack.c.bf16 %v288_v33, %v281_v32  ;;  %v2888_v39 = vpack.c.bf16 %v302_v35, %v295_v34  ;;  %v188_v49 = vand.u32 4294901760, %v187_v15 }
  0x4d   :  { %2186 = vmatprep.subr.bf16.mxu0 %v2818_v56  ;;  %v227_v54 = vand.u32 4294901760, %v226_v20  ;;  %v234_v59 = vand.u32 4294901760, %v233_v21  ;;  %v2201_v60 = vpack.c.bf16 %v220_v47, %v213_v19  ;;  %v240_v61 = vsub.f32 %v2833_v2, %v239_v22 }
  0x4e   :  { %v247_v62 = vsub.f32 %v2836_v3, %v246_v27  ;;  %v254_v12 = vsub.f32 %v2838_v4, %v253_v28  ;;  %v261_v15 = vsub.f32 %v2840_v5, %v260_v29  ;;  %v268_v20 = vsub.f32 %v2842_v6, %v267_v30 }
  0x4f   :  { %v2205_v0 = vpack.c.bf16 %v234_v59, %v227_v54  ;;  %v241_v1 = vand.u32 4294901760, %v240_v61  ;;  %v275_v27 = vsub.f32 %v2844_v7, %v274_v31  ;;  %v289_v28 = vsub.f32 %v2848_v9, %v288_v33 }
  0x50   :  { %2188 = vmatpush3.bf16.msra.mxu0 %v2818_v56  ;;  %v248_v11 = vand.u32 4294901760, %v247_v62  ;;  %v255_v21 = vand.u32 4294901760, %v254_v12  ;;  %v262_v22 = vand.u32 4294901760, %v261_v15  ;;  %v303_v61 = vsub.f32 %v2853_v16, %v302_v35  ;;  %v2907_v35 = vld [vmem:[#allocation8] sm:$0xff] }
  0x51   :  { %2190 = vmatprep.subr.bf16.mxu0 %v2820_v57  ;;  %v276_v54 = vand.u32 4294901760, %v275_v27  ;;  %v290_v30 = vand.u32 4294901760, %v289_v28  ;;  %v2229_v33 = vpack.c.bf16 %v2793_v36, %v2785_v25  ;;  %v2237_v25 = vpack.c.bf16 %v2815_v55, %v2807_v51 }
  0x52   :  { %v2209_v19 = vpack.c.bf16 %v248_v11, %v241_v1  ;;  %v2213_v47 = vpack.c.bf16 %v262_v22, %v255_v21  ;;  %v2909_v1 = vld [vmem:[#allocation8 + $0x8] sm:$0xff]  ;;  %v806_v11 = vand.u32 4294901760, %v2907_v35  ;;  %v2249_v51 = vpack.c.bf16 %v2844_v7, %v2842_v6 }
  0x53   :  { %v809_v12 = vand.u32 4294901760, %v2909_v1  ;;  %v2253_v55 = vpack.c.bf16 %v2848_v9, %v2846_v8  ;;  %v3011_v9 = vld [vmem:[#allocation8 + $0x50] sm:$0xff] }
  0x54   :  { %2192 = vmatpush3.bf16.msra.mxu0 %v2820_v57 }
  0x55   :  { %2194 = vmatprep.subr.bf16.mxu0 %v2822_v58  ;;  %v2920_v36 = vpack.c.bf16 %v809_v12, %v806_v11  ;;  %v3043_v15 = vsub.f32 %v2909_v1, %v809_v12 }
  0x57   :  { %2358 = vmatprep.subr.bf16.mxu1 %v2920_v36 }
  0x58   :  { %2196 = vmatpush3.bf16.msra.mxu0 %v2822_v58  ;;  %2360 = vmatpush3.bf16.msra.mxu1 %v2920_v36 }
  0x59   :  { %2198 = vmatprep.subr.bf16.mxu0 %v2197_v43 }
  0x5b   :  { %1778 = vmatmul.mubr.f32.vlgmr.msra.gmra.mrb[0].mxu0 %v188_v49  ;;  %v269_v49 = vand.u32 4294901760, %v268_v20  ;;  %v3045_v20 = vld [vmem:[#allocation8 + $0x70] sm:$0xff] }
  0x5c   :  { %2200 = vmatpush3.bf16.msra.mxu0 %v2197_v43  ;;  %1812 = vmatprep.mubr.f32.mxu0 %v2773_v17  ;;  %v282_v43 = vsub.f32 %v2846_v8, %v281_v32  ;;  %v304_v32 = vand.u32 4294901760, %v303_v61  ;;  %v848_v21 = vand.u32 4294901760, %v3045_v20 }
  0x5d   :  { %2202 = vmatprep.subr.bf16.mxu0 %v2201_v60  ;;  %v2217_v59 = vpack.c.bf16 %v276_v54, %v269_v49 }
  0x5e   :  { %v283_v29 = vand.u32 4294901760, %v282_v43  ;;  %v916_v43 = vand.u32 4294901760, %v3043_v15 }
  0x60   :  { %2204 = vmatpush3.bf16.msra.mxu0 %v2201_v60  ;;  %v296_v60 = vsub.f32 %v2851_v14, %v295_v34  ;;  %v2221_v31 = vpack.c.bf16 %v290_v30, %v283_v29  ;;  %v2233_v34 = vpack.c.bf16 %v2805_v50, %v2799_v41  ;;  %v2241_v41 = vpack.c.bf16 %v2836_v3, %v2833_v2 }
  0x61   :  { %2206 = vmatprep.subr.bf16.mxu0 %v2205_v0  ;;  %v2245_v50 = vpack.c.bf16 %v2840_v5, %v2838_v4  ;;  %v2257_v2 = vpack.c.bf16 %v2853_v16, %v2851_v14  ;;  %v3001_v4 = vld [vmem:[#allocation8 + $0x40] sm:$0xff]  ;;  %v3003_v5 = vld [vmem:[#allocation8 + $0x48] sm:$0xff]  ;;  %v3013_v14 = vld [vmem:[#allocation8 + $0x58] sm:$0xff]  ;;  %v836_v16 = vand.u32 4294901760, %v3011_v9  ;;  %v917_v54 = vsub.f32 %v3043_v15, %v916_v43 }
  0x62   :  { %v297_v62 = vand.u32 4294901760, %v296_v60  ;;  %v830_v6 = vand.u32 4294901760, %v3001_v4  ;;  %v833_v7 = vand.u32 4294901760, %v3003_v5 }
  0x63   :  { %v918_v30 = vand.u32 4294901760, %v917_v54 }
  0x64   :  { %2208 = vmatpush3.bf16.msra.mxu0 %v2205_v0  ;;  %v2225_v0 = vpack.c.bf16 %v304_v32, %v297_v62  ;;  %v3009_v8 = vpack.c.bf16 %v833_v7, %v830_v6 }
  0x65   :  { %2210 = vmatprep.subr.bf16.mxu0 %v2209_v19 }
  0x68   :  { %2212 = vmatpush3.bf16.msra.mxu0 %v2209_v19  ;;  %v3047_v19 = vld [vmem:[#allocation8 + $0x78] sm:$0xff] }
  0x69   :  { %2214 = vmatprep.subr.bf16.mxu0 %v2213_v47  ;;  %v851_v22 = vand.u32 4294901760, %v3047_v19 }
  0x6c   :  { %2216 = vmatpush3.bf16.msra.mxu0 %v2213_v47  ;;  %v3059_v47 = vpack.c.bf16 %v851_v22, %v848_v21 }
  0x6d   :  { %2218 = vmatprep.subr.bf16.mxu0 %v2217_v59 }
  0x70   :  { %2220 = vmatpush3.bf16.msra.mxu0 %v2217_v59 }
  0x71   :  { %2222 = vmatprep.subr.bf16.mxu0 %v2221_v31 }
  0x74   :  { %2224 = vmatpush3.bf16.msra.mxu0 %v2221_v31 }
  0x75   :  { %2226 = vmatprep.subr.bf16.mxu0 %v2225_v0 }
  0x78   :  { %2228 = vmatpush3.bf16.msra.mxu0 %v2225_v0 }
  0x79   :  { %2230 = vmatprep.subr.bf16.mxu0 %v2229_v33 }
  0x7b   :  { %1813 = vmatmul.mubr.f32.vlgmr.msra.gmra.mrb[0].mxu0 %v2797_v40 }
  0x7c   :  { %2232 = vmatpush3.bf16.msra.mxu0 %v2229_v33  ;;  %1847 = vmatprep.mubr.f32.mxu0 %v2781_v23 }
  0x7d   :  { %2234 = vmatprep.subr.bf16.mxu0 %v2233_v34 }
  0x80   :  { %2236 = vmatpush3.bf16.msra.mxu0 %v2233_v34 }
  0x81   :  { %2238 = vmatprep.subr.bf16.mxu0 %v2237_v25 }
  0x84   :  { %2240 = vmatpush3.bf16.msra.mxu0 %v2237_v25 }
  0x85   :  { %2242 = vmatprep.subr.bf16.mxu0 %v2241_v41 }
  0x88   :  { %2244 = vmatpush3.bf16.msra.mxu0 %v2241_v41 }
  0x89   :  { %2246 = vmatprep.subr.bf16.mxu0 %v2245_v50 }
  0x8c   :  { %2248 = vmatpush3.bf16.msra.mxu0 %v2245_v50 }
  0x8d   :  { %2250 = vmatprep.subr.bf16.mxu0 %v2249_v51 }
  0x90   :  { %2252 = vmatpush3.bf16.msra.mxu0 %v2249_v51 }
  0x91   :  { %2254 = vmatprep.subr.bf16.mxu0 %v2253_v55 }
  0x94   :  { %2256 = vmatpush3.bf16.msra.mxu0 %v2253_v55 }
  0x95   :  { %2258 = vmatprep.subr.bf16.mxu0 %v2257_v2 }
  0x98   :  { %2260 = vmatpush3.bf16.msra.mxu0 %v2257_v2 }
  0x99   :  { %2262 = vmatprep.subr.bf16.mxu0 %v2763_v10 }
  0x9b   :  { %1848 = vmatmul.mubr.f32.vlgmr.msra.gmra.mrb[0].mxu0 %v2812_v53 }
  0x9c   :  { %2264 = vmatpush3.bf16.msra.mxu0 %v2763_v10  ;;  %1882 = vmatprep.mubr.f32.mxu0 %v176_v24  ;;  %v793_v24 = vld [vmem:[#allocation8 + $0x20] sm:$0xff] }
  0x9d   :  { %2266 = vmatprep.subr.bf16.mxu0 %v2765_v13 }
  0xa0   :  { %2268 = vmatpush3.bf16.msra.mxu0 %v2765_v13 }
  0xa1   :  { %2270 = vmatprep.subr.bf16.mxu0 %v2776_v18 }
  0xa4   :  { %2272 = vmatpush3.bf16.msra.mxu0 %v2776_v18 }
  0xa5   :  { %2274 = vmatprep.subr.bf16.mxu0 %v2788_v26 }
  0xa8   :  { %2276 = vmatpush3.bf16.msra.mxu0 %v2788_v26 }
  0xa9   :  { %2278 = vmatprep.subr.bf16.mxu0 %v2802_v42 }
  0xac   :  { %2280 = vmatpush3.bf16.msra.mxu0 %v2802_v42 }
  0xad   :  { %2282 = vmatprep.subr.bf16.mxu0 %v2818_v56 }
  0xb0   :  { %2284 = vmatpush3.bf16.msra.mxu0 %v2818_v56 }
  0xb1   :  { %2286 = vmatprep.subr.bf16.mxu0 %v2820_v57 }
  0xb4   :  { %2288 = vmatpush3.bf16.msra.mxu0 %v2820_v57 }
  0xb5   :  { %2290 = vmatprep.subr.bf16.mxu0 %v2822_v58 }
  0xb8   :  { %2292 = vmatpush3.bf16.msra.mxu0 %v2822_v58 }
  0xb9   :  { %2294 = vmatprep.subr.bf16.mxu0 %v2872_v37 }
  0xbb   :  { %1883 = vmatmul.mubr.f32.vlgmr.msra.gmra.mrb[0].mxu0 %v186_v63 }
  0xbc   :  { %2296 = vmatpush3.bf16.msra.mxu0 %v2872_v37  ;;  %1917 = vmatprep.mubr.f32.mxu0 %v2773_v17  ;;  %v839_v37 = vand.u32 4294901760, %v3013_v14 }
  0xbd   :  { %2298 = vmatprep.subr.bf16.mxu0 %v2874_v38 }
  0xc0   :  { %2300 = vmatpush3.bf16.msra.mxu0 %v2874_v38  ;;  %v3019_v38 = vpack.c.bf16 %v839_v37, %v836_v16 }
  0xc1   :  { %2302 = vmatprep.subr.bf16.mxu0 %v2877_v44 }
  0xc4   :  { %2304 = vmatpush3.bf16.msra.mxu0 %v2877_v44  ;;  %v3021_v44 = vld [vmem:[#allocation8 + $0x60] sm:$0xff] }
  0xc5   :  { %2306 = vmatprep.subr.bf16.mxu0 %v2879_v45 }
  0xc8   :  { %2308 = vmatpush3.bf16.msra.mxu0 %v2879_v45  ;;  %v3023_v45 = vld [vmem:[#allocation8 + $0x68] sm:$0xff] }
  0xc9   :  { %2310 = vmatprep.subr.bf16.mxu0 %v2881_v46 }
  0xcc   :  { %2312 = vmatpush3.bf16.msra.mxu0 %v2881_v46  ;;  %v842_v46 = vand.u32 4294901760, %v3021_v44 }
  0xcd   :  { %2314 = vmatprep.subr.bf16.mxu0 %v2884_v48 }
  0xd0   :  { %2316 = vmatpush3.bf16.msra.mxu0 %v2884_v48  ;;  %v845_v48 = vand.u32 4294901760, %v3023_v45 }
  0xd1   :  { %2318 = vmatprep.subr.bf16.mxu0 %v2886_v52 }
  0xd4   :  { %2320 = vmatpush3.bf16.msra.mxu0 %v2886_v52  ;;  %v3033_v52 = vpack.c.bf16 %v845_v48, %v842_v46 }
  0xd5   :  { %2322 = vmatprep.subr.bf16.mxu0 %v2888_v39 }
  0xd8   :  { %2324 = vmatpush3.bf16.msra.mxu0 %v2888_v39  ;;  %v3038_v39 = vsub.f32 %v2907_v35, %v806_v11 }
  0xd9   :  { %2326 = vmatprep.subr.bf16.mxu0 %v2763_v10 }
  0xda   :  { %v909_v27 = vand.u32 4294901760, %v3038_v39 }
  0xdb   :  { %1918 = vmatmul.mubr.f32.vlgmr.msra.gmra.mrb[0].mxu0 %v2797_v40 }
  0xdc   :  { %2328 = vmatpush3.bf16.msra.mxu0 %v2763_v10  ;;  %1952 = vmatprep.mubr.f32.mxu0 %v2773_v17  ;;  %v791_v10 = vld [vmem:[#allocation8 + $0x10] sm:$0xff]  ;;  %v910_v49 = vsub.f32 %v3038_v39, %v909_v27 }
  0xdd   :  { %2330 = vmatprep.subr.bf16.mxu0 %v2765_v13  ;;  %v812_v17 = vand.u32 4294901760, %v791_v10 }
  0xde   :  { %v911_v59 = vand.u32 4294901760, %v910_v49 }
  0xdf   :  { %v3067_v28 = vsub.f32 %v791_v10, %v812_v17 }
  0xe0   :  { %2332 = vmatpush3.bf16.msra.mxu0 %v2765_v13  ;;  %v792_v13 = vld [vmem:[#allocation8 + $0x18] sm:$0xff]  ;;  %v3075_v31 = vpack.c.bf16 %v918_v30, %v911_v59 }
  0xe1   :  { %2334 = vmatprep.subr.bf16.mxu0 %v2776_v18  ;;  %v923_v60 = vand.u32 4294901760, %v3067_v28 }
  0xe3   :  { %v924_v62 = vsub.f32 %v3067_v28, %v923_v60 }
  0xe4   :  { %2336 = vmatpush3.bf16.msra.mxu0 %v2776_v18  ;;  %v815_v18 = vand.u32 4294901760, %v792_v13 }
  0xe5   :  { %2338 = vmatprep.subr.bf16.mxu0 %v2788_v26  ;;  %v925_v34 = vand.u32 4294901760, %v924_v62 }
  0xe6   :  { %v2991_v23 = vpack.c.bf16 %v815_v18, %v812_v17  ;;  %v3069_v29 = vsub.f32 %v792_v13, %v815_v18 }
  0xe8   :  { %2340 = vmatpush3.bf16.msra.mxu0 %v2788_v26  ;;  %v794_v26 = vld [vmem:[#allocation8 + $0x28] sm:$0xff]  ;;  %2362 = vmatprep.subr.bf16.mxu1 %v2991_v23  ;;  %v930_v61 = vand.u32 4294901760, %v3069_v29 }
  0xe9   :  { %2342 = vmatprep.subr.bf16.mxu0 %v2802_v42  ;;  %v821_v53 = vand.u32 4294901760, %v794_v26  ;;  %2364 = vmatpush3.bf16.msra.mxu1 %v2991_v23 }
  0xea   :  { %v931_v32 = vsub.f32 %v3069_v29, %v930_v61 }
  0xeb   :  { %v3085_v33 = vsub.f32 %v794_v26, %v821_v53  ;;  %v3113_v26 = vsub.f32 %v3003_v5, %v833_v7  ;;  %v3127_v5 = vsub.f32 %v3011_v9, %v836_v16  ;;  %v3152_v16 = vsub.f32 %v3023_v45, %v845_v48 }
  0xec   :  { %2344 = vmatpush3.bf16.msra.mxu0 %v2802_v42  ;;  %v818_v42 = vand.u32 4294901760, %v793_v24  ;;  %v932_v35 = vand.u32 4294901760, %v931_v32  ;;  %v3167_v45 = vsub.f32 %v3047_v19, %v851_v22 }
  0xed   :  { %2346 = vmatprep.subr.bf16.mxu0 %v2818_v56  ;;  %v944_v11 = vand.u32 4294901760, %v3085_v33  ;;  %v3322_v59 = vand.u32 4294901760, %v3127_v5 }
  0xee   :  { %v3083_v0 = vsub.f32 %v793_v24, %v818_v42  ;;  %v3090_v12 = vpack.c.bf16 %v932_v35, %v925_v34  ;;  %v3110_v24 = vsub.f32 %v3001_v4, %v830_v6  ;;  %v3130_v6 = vsub.f32 %v3013_v14, %v839_v37 }
  0xef   :  { %v945_v41 = vsub.f32 %v3085_v33, %v944_v11  ;;  %v980_v32 = vsub.f32 %v3127_v5, %v3322_v59  ;;  %v3147_v14 = vsub.f32 %v3021_v44, %v842_v46  ;;  %v3162_v44 = vsub.f32 %v3045_v20, %v848_v21 }
  0xf0   :  { %2348 = vmatpush3.bf16.msra.mxu0 %v2818_v56  ;;  %v2995_v56 = vpack.c.bf16 %v821_v53, %v818_v42  ;;  %v937_v1 = vand.u32 4294901760, %v3083_v0  ;;  %v3321_v30 = vand.u32 4294901760, %v3130_v6 }
  0xf1   :  { %2350 = vmatprep.subr.bf16.mxu0 %v2820_v57  ;;  %v946_v2 = vand.u32 4294901760, %v945_v41  ;;  %v981_v37 = vand.u32 4294901760, %v980_v32  ;;  %v3320_v35 = vand.u32 4294901760, %v3147_v14  ;;  %v2437_v32 = vpack.c.bf16 %v3113_v26, %v3110_v24 }
  0xf2   :  { %2366 = vmatprep.subr.bf16.mxu1 %v2995_v56  ;;  %v938_v25 = vsub.f32 %v3083_v0, %v937_v1  ;;  %v987_v9 = vsub.f32 %v3130_v6, %v3321_v30 }
  0xf3   :  { %2368 = vmatpush3.bf16.msra.mxu1 %v2995_v56 }
  0xf4   :  { %2352 = vmatpush3.bf16.msra.mxu0 %v2820_v57  ;;  %v795_v57 = vld [vmem:[#allocation8 + $0x30] sm:$0xff]  ;;  %v939_v55 = vand.u32 4294901760, %v938_v25  ;;  %v988_v34 = vand.u32 4294901760, %v987_v9  ;;  %v3319_v25 = vand.u32 4294901760, %v3152_v16  ;;  %v2441_v9 = vpack.c.bf16 %v3130_v6, %v3127_v5 }
  0xf5   :  { %2354 = vmatprep.subr.bf16.mxu0 %v2822_v58 }
  0xf6   :  { %v3104_v17 = vpack.c.bf16 %v946_v2, %v939_v55  ;;  %v2409_v41 = vpack.c.bf16 %v988_v34, %v981_v37  ;;  %v994_v55 = vsub.f32 %v3147_v14, %v3320_v35  ;;  %v1001_v46 = vsub.f32 %v3152_v16, %v3319_v25 }
  0xf7   :  { %v3318_v2 = vand.u32 4294901760, %v3162_v44  ;;  %v2445_v37 = vpack.c.bf16 %v3152_v16, %v3147_v14  ;;  %v2449_v34 = vpack.c.bf16 %v3167_v45, %v3162_v44 }
  0xf8   :  { %2356 = vmatpush3.bf16.msra.mxu0 %v2822_v58  ;;  %v796_v58 = vld [vmem:[#allocation8 + $0x38] sm:$0xff]  ;;  %v995_v48 = vand.u32 4294901760, %v994_v55  ;;  %v1527_v55 = vld [vmem:[%s3313_s2] ss:$0 sm:$0xff] }
  0xf9   :  { %v827_v63 = vand.u32 4294901760, %v796_v58  ;;  %v1008_v20 = vsub.f32 %v3162_v44, %v3318_v2 }
  0xfb   :  { %1953 = vmatmul.mubr.f32.vlgmr.msra.gmra.mrb[0].mxu0 %v2797_v40  ;;  %v824_v40 = vand.u32 4294901760, %v795_v57  ;;  %v3100_v51 = vsub.f32 %v796_v58, %v827_v63  ;;  %v3323_v58 = vand.u32 4294901760, %v3113_v26  ;;  %v1009_v22 = vand.u32 4294901760, %v1008_v20 }
  0xfd   :  { %v2999_v3 = vpack.c.bf16 %v827_v63, %v824_v40  ;;  %v3098_v50 = vsub.f32 %v795_v57, %v824_v40  ;;  %v3325_v13 = vand.u32 4294901760, %v3100_v51  ;;  %v3324_v57 = vand.u32 4294901760, %v3110_v24 }
  0xfe   :  { %v973_v4 = vsub.f32 %v3113_v26, %v3323_v58 }
  0xff   :  { %2370 = vmatprep.subr.bf16.mxu1 %v2999_v3  ;;  %v951_v10 = vand.u32 4294901760, %v3098_v50  ;;  %v959_v42 = vsub.f32 %v3100_v51, %v3325_v13  ;;  %v966_v63 = vsub.f32 %v3110_v24, %v3324_v57 }
 0x100   :  { %2372 = vmatpush3.bf16.msra.mxu1 %v2999_v3  ;;  %v974_v54 = vand.u32 4294901760, %v973_v4  ;;  %v2425_v4 = vpack.c.bf16 %v3069_v29, %v3067_v28  ;;  %v3328_v28 = vand.u32 4294901760, %v3113_v26 }
 0x101   :  { %2374 = vmatprep.subr.bf16.mxu1 %v3009_v8  ;;  %v952_v18 = vsub.f32 %v3098_v50, %v951_v10  ;;  %v960_v40 = vand.u32 4294901760, %v959_v42  ;;  %v967_v49 = vand.u32 4294901760, %v966_v63  ;;  %v1002_v42 = vand.u32 4294901760, %v1001_v46 }
 0x102   :  { %v2421_v63 = vpack.c.bf16 %v3043_v15, %v3038_v39  ;;  %v2493_v39 = vpack.c.bf16 %v944_v11, %v937_v1  ;;  %v3326_v15 = vand.u32 4294901760, %v3100_v51  ;;  %v3332_v1 = vand.u32 4294901760, %v3152_v16 }
 0x103   :  { %v953_v53 = vand.u32 4294901760, %v952_v18  ;;  %v3136_v62 = vpack.c.bf16 %v974_v54, %v967_v49  ;;  %v3317_v18 = vand.u32 4294901760, %v3167_v45  ;;  %v2413_v19 = vpack.c.bf16 %v1002_v42, %v995_v48 }
 0x104   :  { %2376 = vmatpush3.bf16.msra.mxu1 %v3009_v8  ;;  %v2429_v49 = vpack.c.bf16 %v3085_v33, %v3083_v0  ;;  %v2433_v54 = vpack.c.bf16 %v3100_v51, %v3098_v50  ;;  %v3331_v33 = vand.u32 4294901760, %v3147_v14  ;;  %v3333_v50 = vand.u32 4294901760, %v3162_v44 }
 0x105   :  { %2378 = vmatprep.subr.bf16.mxu1 %v3019_v38  ;;  %v3132_v7 = vpack.c.bf16 %v960_v40, %v953_v53  ;;  %v1015_v21 = vsub.f32 %v3167_v45, %v3317_v18  ;;  %v3334_v51 = vand.u32 4294901760, %v3167_v45 }
 0x106   :  { %v2509_v11 = vpack.c.bf16 %v3332_v1, %v3331_v33 }
 0x107   :  { %v1016_v53 = vand.u32 4294901760, %v1015_v21 }
 0x108   :  { %2380 = vmatpush3.bf16.msra.mxu1 %v3019_v38 }
 0x109   :  { %2382 = vmatprep.subr.bf16.mxu1 %v3033_v52  ;;  %v2417_v40 = vpack.c.bf16 %v1016_v53, %v1009_v22 }
 0x10c   :  { %2384 = vmatpush3.bf16.msra.mxu1 %v3033_v52 }
 0x10d   :  { %2386 = vmatprep.subr.bf16.mxu1 %v3059_v47 }
 0x110   :  { %2388 = vmatpush3.bf16.msra.mxu1 %v3059_v47 }
 0x111   :  { %2390 = vmatprep.subr.bf16.mxu1 %v3075_v31 }
 0x1ce   :  { %v1954_v46 = vpop.f32.mrb[0].mxu0 }
 0x1cf   :  { %v2549_v48 = vadd.f32 %v1954_v46, %v1527_v55  ;;  %v767_v42 = vpop.f32.mrb[1].mxu0 }
 0x1d0   :  { %v2550_v20 = vadd.f32 %v1527_v55, %v767_v42 }
 0x1d1   :  { %v780_v21 = vmul.f32 0.70710677, %v2549_v48  ;;  %v778_v2 = vmul.f32 0.5, %v2549_v48 }
 0x1d2   :  { %v779_v22 = vmul.f32 0.70710677, %v2550_v20  ;;  %v777_v35 = vmul.f32 0.5, %v2550_v20 }
 0x1d3   :  { %2577 = verf.f32 %v780_v21 }
 0x1d4   :  { %2579 = verf.f32 %v779_v22 }
 0x1dd   :  { %v2578_v53 = vpop.eup %2577 }
 0x1de   :  { %v2580_v18 = vpop.eup %2579  ;;  %v784_v25 = vadd.f32 1.0, %v2578_v53 }
 0x1df   :  { %v783_v30 = vadd.f32 1.0, %v2580_v18 }
 0x1e0   :  { %v786_v59 = vmul.f32 %v784_v25, %v778_v2 }
 0x1e1   :  { %v785_v58 = vmul.f32 %v783_v30, %v777_v35 }
 0x1e2   :  { %v3199_v57 = vand.u32 4294901760, %v786_v59 }
 0x1e3   :  { %v3201_v13 = vand.u32 4294901760, %v785_v58 }
 0x1e4   :  { %v3204_v46 = vsub.f32 %v786_v59, %v3199_v57 }
 0x1e5   :  { %v887_v55 = vsub.f32 %v785_v58, %v3201_v13 }
 0x1e6   :  { %v898_v42 = vand.u32 4294901760, %v3204_v46 }
 0x1e7   :  { %v888_v21 = vand.u32 4294901760, %v887_v55 }
 0x1e8   :  { %v899_v48 = vsub.f32 %v3204_v46, %v898_v42 }
 0x1e9   :  { %v889_v20 = vsub.f32 %v887_v55, %v888_v21 }
 0x1ea   :  { %v900_v25 = vand.u32 4294901760, %v899_v48 }
 0x1eb   :  { %v890_v18 = vand.u32 4294901760, %v889_v20 }
 0x1ed   :  { %1987 = vmatprep.mubr.f32.mxu1 %v890_v18 }
 0x1ee   :  { %1988 = vmatmul.mubr.f32.vlgmr.msra.gmra.mrb[0].mxu1 %v900_v25 }
 0x1ef   :  { %2392 = vmatpush3.bf16.msra.mxu1 %v3075_v31  ;;  %2022 = vmatprep.mubr.f32.mxu1 %v3201_v13  ;;  %v2485_v31 = vpack.c.bf16 %v916_v43, %v909_v27  ;;  %v2497_v27 = vpack.c.bf16 %v3326_v15, %v951_v10  ;;  %v3327_v43 = vand.u32 4294901760, %v3110_v24  ;;  %v2513_v10 = vpack.c.bf16 %v3334_v51, %v3333_v50 }
 0x1f0   :  { %2394 = vmatprep.subr.bf16.mxu1 %v3090_v12 }
 0x1f1   :  { %v2501_v29 = vpack.c.bf16 %v3328_v28, %v3327_v43 }
 0x1f3   :  { %2396 = vmatpush3.bf16.msra.mxu1 %v3090_v12  ;;  %v2489_v12 = vpack.c.bf16 %v930_v61, %v923_v60  ;;  %v3329_v60 = vand.u32 4294901760, %v3127_v5  ;;  %v3330_v61 = vand.u32 4294901760, %v3130_v6 }
 0x1f4   :  { %2398 = vmatprep.subr.bf16.mxu1 %v3104_v17 }
 0x1f5   :  { %v2505_v0 = vpack.c.bf16 %v3330_v61, %v3329_v60 }
 0x1f7   :  { %2400 = vmatpush3.bf16.msra.mxu1 %v3104_v17 }
 0x1f8   :  { %2402 = vmatprep.subr.bf16.mxu1 %v3132_v7 }
 0x1fb   :  { %2404 = vmatpush3.bf16.msra.mxu1 %v3132_v7 }
 0x1fc   :  { %2406 = vmatprep.subr.bf16.mxu1 %v3136_v62 }
 0x1ff   :  { %2408 = vmatpush3.bf16.msra.mxu1 %v3136_v62 }
 0x200   :  { %2410 = vmatprep.subr.bf16.mxu1 %v2409_v41 }
 0x203   :  { %2412 = vmatpush3.bf16.msra.mxu1 %v2409_v41 }
 0x204   :  { %2414 = vmatprep.subr.bf16.mxu1 %v2413_v19 }
 0x207   :  { %2416 = vmatpush3.bf16.msra.mxu1 %v2413_v19 }
 0x208   :  { %2418 = vmatprep.subr.bf16.mxu1 %v2417_v40 }
 0x20b   :  { %2420 = vmatpush3.bf16.msra.mxu1 %v2417_v40 }
 0x20c   :  { %2422 = vmatprep.subr.bf16.mxu1 %v2421_v63 }
 0x20e   :  { %2023 = vmatmul.mubr.f32.vlgmr.msra.gmra.mrb[0].mxu1 %v3199_v57 }
 0x20f   :  { %2424 = vmatpush3.bf16.msra.mxu1 %v2421_v63  ;;  %2057 = vmatprep.mubr.f32.mxu1 %v887_v55 }
 0x210   :  { %2426 = vmatprep.subr.bf16.mxu1 %v2425_v4 }
 0x213   :  { %2428 = vmatpush3.bf16.msra.mxu1 %v2425_v4 }
 0x214   :  { %2430 = vmatprep.subr.bf16.mxu1 %v2429_v49 }
 0x217   :  { %2432 = vmatpush3.bf16.msra.mxu1 %v2429_v49 }
 0x218   :  { %2434 = vmatprep.subr.bf16.mxu1 %v2433_v54 }
 0x21b   :  { %2436 = vmatpush3.bf16.msra.mxu1 %v2433_v54 }
 0x21c   :  { %2438 = vmatprep.subr.bf16.mxu1 %v2437_v32 }
 0x21f   :  { %2440 = vmatpush3.bf16.msra.mxu1 %v2437_v32 }
 0x220   :  { %2442 = vmatprep.subr.bf16.mxu1 %v2441_v9 }
 0x223   :  { %2444 = vmatpush3.bf16.msra.mxu1 %v2441_v9 }
 0x224   :  { %2446 = vmatprep.subr.bf16.mxu1 %v2445_v37 }
 0x227   :  { %2448 = vmatpush3.bf16.msra.mxu1 %v2445_v37 }
 0x228   :  { %2450 = vmatprep.subr.bf16.mxu1 %v2449_v34 }
 0x22b   :  { %2452 = vmatpush3.bf16.msra.mxu1 %v2449_v34 }
 0x22c   :  { %2454 = vmatprep.subr.bf16.mxu1 %v2920_v36 }
 0x22e   :  { %2058 = vmatmul.mubr.f32.vlgmr.msra.gmra.mrb[0].mxu1 %v3204_v46 }
 0x22f   :  { %2456 = vmatpush3.bf16.msra.mxu1 %v2920_v36  ;;  %2092 = vmatprep.mubr.f32.mxu1 %v888_v21 }
 0x230   :  { %2458 = vmatprep.subr.bf16.mxu1 %v2991_v23 }
 0x233   :  { %2460 = vmatpush3.bf16.msra.mxu1 %v2991_v23 }
 0x234   :  { %2462 = vmatprep.subr.bf16.mxu1 %v2995_v56 }
 0x237   :  { %2464 = vmatpush3.bf16.msra.mxu1 %v2995_v56 }
 0x238   :  { %2466 = vmatprep.subr.bf16.mxu1 %v2999_v3 }
 0x23b   :  { %2468 = vmatpush3.bf16.msra.mxu1 %v2999_v3 }
 0x23c   :  { %2470 = vmatprep.subr.bf16.mxu1 %v3009_v8 }
 0x23f   :  { %2472 = vmatpush3.bf16.msra.mxu1 %v3009_v8 }
 0x240   :  { %2474 = vmatprep.subr.bf16.mxu1 %v3019_v38 }
 0x243   :  { %2476 = vmatpush3.bf16.msra.mxu1 %v3019_v38 }
 0x244   :  { %2478 = vmatprep.subr.bf16.mxu1 %v3033_v52 }
 0x247   :  { %2480 = vmatpush3.bf16.msra.mxu1 %v3033_v52 }
 0x248   :  { %2482 = vmatprep.subr.bf16.mxu1 %v3059_v47 }
 0x24b   :  { %2484 = vmatpush3.bf16.msra.mxu1 %v3059_v47 }
 0x24c   :  { %2486 = vmatprep.subr.bf16.mxu1 %v2485_v31 }
 0x24e   :  { %2093 = vmatmul.mubr.f32.vlgmr.msra.gmra.mrb[0].mxu1 %v898_v42 }
 0x24f   :  { %2488 = vmatpush3.bf16.msra.mxu1 %v2485_v31  ;;  %2127 = vmatprep.mubr.f32.mxu1 %v3201_v13 }
 0x250   :  { %2490 = vmatprep.subr.bf16.mxu1 %v2489_v12 }
 0x253   :  { %2492 = vmatpush3.bf16.msra.mxu1 %v2489_v12 }
 0x254   :  { %2494 = vmatprep.subr.bf16.mxu1 %v2493_v39 }
 0x257   :  { %2496 = vmatpush3.bf16.msra.mxu1 %v2493_v39 }
 0x258   :  { %2498 = vmatprep.subr.bf16.mxu1 %v2497_v27 }
 0x25b   :  { %2500 = vmatpush3.bf16.msra.mxu1 %v2497_v27 }
 0x25c   :  { %2502 = vmatprep.subr.bf16.mxu1 %v2501_v29 }
 0x25f   :  { %2504 = vmatpush3.bf16.msra.mxu1 %v2501_v29 }
 0x260   :  { %2506 = vmatprep.subr.bf16.mxu1 %v2505_v0 }
 0x263   :  { %2508 = vmatpush3.bf16.msra.mxu1 %v2505_v0 }
 0x264   :  { %2510 = vmatprep.subr.bf16.mxu1 %v2509_v11 }
 0x267   :  { %2512 = vmatpush3.bf16.msra.mxu1 %v2509_v11 }
 0x268   :  { %2514 = vmatprep.subr.bf16.mxu1 %v2513_v10 }
 0x26b   :  { %2516 = vmatpush3.bf16.msra.mxu1 %v2513_v10 }
 0x26c   :  { %2518 = vmatprep.subr.bf16.mxu1 %v2920_v36 }
 0x26e   :  { %2128 = vmatmul.mubr.f32.vlgmr.msra.gmra.mrb[0].mxu1 %v3199_v57 }
 0x26f   :  { %2520 = vmatpush3.bf16.msra.mxu1 %v2920_v36  ;;  %2162 = vmatprep.mubr.f32.mxu1 %v3201_v13  ;;  %v1528_v36 = vld [vmem:[%s3315_s4] ss:$0 sm:$0xff] }
 0x270   :  { %2522 = vmatprep.subr.bf16.mxu1 %v2991_v23 }
 0x273   :  { %2524 = vmatpush3.bf16.msra.mxu1 %v2991_v23 }
 0x274   :  { %2526 = vmatprep.subr.bf16.mxu1 %v2995_v56 }
 0x277   :  { %2528 = vmatpush3.bf16.msra.mxu1 %v2995_v56 }
 0x278   :  { %2530 = vmatprep.subr.bf16.mxu1 %v2999_v3 }
 0x27b   :  { %2532 = vmatpush3.bf16.msra.mxu1 %v2999_v3 }
 0x27c   :  { %2534 = vmatprep.subr.bf16.mxu1 %v3009_v8 }
 0x27f   :  { %2536 = vmatpush3.bf16.msra.mxu1 %v3009_v8 }
 0x280   :  { %2538 = vmatprep.subr.bf16.mxu1 %v3019_v38 }
 0x283   :  { %2540 = vmatpush3.bf16.msra.mxu1 %v3019_v38 }
 0x284   :  { %2542 = vmatprep.subr.bf16.mxu1 %v3033_v52 }
 0x287   :  { %2544 = vmatpush3.bf16.msra.mxu1 %v3033_v52 }
 0x288   :  { %2546 = vmatprep.subr.bf16.mxu1 %v3059_v47 }
 0x28b   :  { %2548 = vmatpush3.bf16.msra.mxu1 %v3059_v47 }
 0x28e   :  { %2163 = vmatmul.mubr.f32.vlgmr.msra.gmra.mrb[0].mxu1 %v3199_v57 }
 0x361   :  { %v2164_v23 = vpop.f32.mrb[0].mxu1 }
 0x362   :  { %v1506_v56 = vadd.f32 %v2164_v23, %v1528_v36  ;;  %v1479_v3 = vpop.f32.mrb[1].mxu1 }
 0x363   :  { %v1505_v8 = vadd.f32 %v1528_v36, %v1479_v3 }
 0x364   :  { %1508 = vst [vmem:[#allocation9 + $0x8] sm:$0xff] %v1506_v56 }
 0x365   :  { %1507 = vst [vmem:[#allocation9] sm:$0xff] %v1505_v8 }
 0x366   :  { %2658 = shalt.err (!%p2655_p0)
}
 0x367   :  { %s2659_s4 = scalar_lea.hbm %s3316_s5, 256 }
 0x368   :  { %p2660_p1 = scmp.ne.s32.totalorder %s3316_s5, %s2659_s4  ;;  %p2663_p2 = scmp.lt.u32.totalorder %s2659_s4, %s3316_s5 }
 0x36a   :  { %p2665_p3 = pnand %p2663_p2, %p2660_p1 }
 0x36c   :  { %2668 = shalt.err (!%p2665_p3)
}
 0x36d   :  { %1520 = dma.vmem_to_hbm [thread:$0]  %s1515_s9, 256, %s3316_s5, [#allocation5], %s2677_s30, %s2677_s30, %s2678_s6  }
 0x36e   :  { %2673 = dma.done.wait [#allocation5], 256  }
 0x36f   :  { %2674 = vsyncadd [#allocation5], 4294967040 }
 0x370   :  { %1524 = vsyncpa [#allocation4], 1 }
 0x371   :  { %1525 = vsyncpa [#allocation7], 1 }
 0x372   :  { %1526 = vsyncpa [#allocation5], 1 }

</bundles_post_ra>
